<compile_context>
chip_gen: v5e
topology: v5e:2x2
jax: 0.10.0
libtpu: 0.0.40
codegen_flags: <defaults>
</compile_context>

<pallas_src>
import functools

import jax
import jax.numpy as jnp
from jax.experimental import pallas as pl
from jax.experimental.pallas import tpu as pltpu

# ---- "config" constants (config.* in the original module) -------------------
STATE_SIZE = 32
HIDDEN = 256
MIN_EMB_SIZE = 1.0
MAX_EMB_SIZE = 128.0
INIT_W = 0.003

_TILE_B = 512  # default batch tile: multiple of 256 (fills v6e/v7x MXU M dim)


def _round_up(x, m):
    return ((x + m - 1) // m) * m


def _actor_kernel(x_ref, w1_ref, b1_ref, w2_ref, b2_ref, w3_ref, b3_ref,
                  o_ref, *, scale, offset):
    # fc1 + ReLU (MXU, f32 accumulation). x is cast to the matmul dtype here,
    # inside the kernel, so the wrapper never issues a separate astype op.
    x = x_ref[...]
    if x.dtype != w1_ref.dtype:
        x = x.astype(w1_ref.dtype)
    h = jnp.dot(x, w1_ref[...], preferred_element_type=jnp.float32)
    h = jnp.maximum(h + b1_ref[...], 0.0)

    # fc2 + ReLU (MXU, f32 accumulation).
    h = jnp.dot(h.astype(w2_ref.dtype), w2_ref[...],
                preferred_element_type=jnp.float32)
    h = jnp.maximum(h + b2_ref[...], 0.0)

    # fc3 (out_features == 1): VPU multiply, fold 256 -> 128 lanes with one VPU
    # add (halves the XLU reduce work), then a single lane reduction.
    prod = h * w3_ref[...]                               # (tile_b, 256) f32
    half = prod.shape[-1] // 2
    folded = prod[:, :half] + prod[:, half:]             # (tile_b, 128)
    y = jnp.sum(folded, axis=-1, keepdims=True)          # (tile_b, 1)

    # One XLU relayout to a lane-dense row so the tanh epilogue and the
    # writeback store are full-lane instead of masked 1/128-lane stores.
    y_row = y.T                                          # (1, tile_b)
    z = scale * jnp.tanh(y_row + b3_ref[0, 0]) + offset  # folded rescale
    o_ref[...] = z.reshape(o_ref.shape)                  # (1, 1, tile_b)


def prepare_actor_params(params, matmul_dtype=jnp.bfloat16):
    """One-time pre-cast of the MXU operands (w1, w2); do this OUTSIDE the hot path."""
    w1, b1, w2, b2, w3, b3 = params
    return (w1.astype(matmul_dtype), b1, w2.astype(matmul_dtype), b2, w3, b3)


def actor_forward(x, params, *, tile_b=_TILE_B):
    """x: (B, STATE_SIZE) float32 -> (B, 1) float32.

    The matmul dtype is taken from the (pre-cast) w1/w2 in `params`.
    """
    w1, b1, w2, b2, w3, b3 = params
    B = x.shape[0]

    # Tile selection: 16-row granularity, keep >=2 grid steps with a
    # 256-aligned M dim when the batch is large enough, one tile otherwise.
    b16 = _round_up(B, 16)
    tile_b = min(tile_b, b16, _round_up(pl.cdiv(b16, 2), 256))
    b_pad = _round_up(b16, tile_b)            # pad to a full multiple of tile_b
    if b_pad != B:
        x = jnp.pad(x, ((0, b_pad - B), (0, 0)))
    num_tiles = b_pad // tile_b

    kernel = functools.partial(
        _actor_kernel,
        scale=(MAX_EMB_SIZE - MIN_EMB_SIZE) * 0.5,
        offset=(MAX_EMB_SIZE - MIN_EMB_SIZE) * 0.5 + MIN_EMB_SIZE)

    const = lambda i: (0, 0)  # weights/biases: same block every step -> VMEM-resident

    out = pl.pallas_call(
        kernel,
        out_shape=jax.ShapeDtypeStruct((num_tiles, 1, tile_b), jnp.float32),
        grid=(num_tiles,),
        in_specs=[
            pl.BlockSpec((tile_b, STATE_SIZE), lambda i: (i, 0)),      # x tile
            pl.BlockSpec((STATE_SIZE, HIDDEN), const),                 # w1
            pl.BlockSpec((1, HIDDEN), const),                          # b1
            pl.BlockSpec((HIDDEN, HIDDEN), const),                     # w2
            pl.BlockSpec((1, HIDDEN), const),                          # b2
            pl.BlockSpec((1, HIDDEN), const),                          # w3 (PyTorch (out=1, in) layout)
            pl.BlockSpec((1, 1), const,
                         memory_space=pltpu.MemorySpace.SMEM),         # b3 scalar
        ],
        out_specs=pl.BlockSpec((1, 1, tile_b), lambda i: (i, 0, 0)),   # lane-dense rows
        compiler_params=pltpu.CompilerParams(
            # Independent batch tiles -> shard across v7x's 2 TensorCores.
            dimension_semantics=("parallel",),
            # Covers large tiles on v5e's smaller (16 MiB) default scoped VMEM.
            vmem_limit_bytes=32 * 1024 * 1024),
    )(x, w1, b1, w2, b2, w3, b3)

    return out.reshape(b_pad, 1)[:B]


def init_actor_params(key):
    """Deterministic init mirroring nn.Linear defaults + fc3.weight ~ U(-init_w, init_w)."""
    k1, k2, k3, k4, k5, k6 = jax.random.split(key, 6)

    def uniform(k, shape, bound):
        return jax.random.uniform(k, shape, jnp.float32, -bound, bound)

    bound1 = 1.0 / (STATE_SIZE ** 0.5)
    bound2 = 1.0 / (HIDDEN ** 0.5)

    w1 = uniform(k1, (STATE_SIZE, HIDDEN), bound1)   # (in, out); PyTorch stores (out, in)
    b1 = uniform(k2, (1, HIDDEN), bound1)
    w2 = uniform(k3, (HIDDEN, HIDDEN), bound2)
    b2 = uniform(k4, (1, HIDDEN), bound2)
    w3 = uniform(k5, (1, HIDDEN), INIT_W)            # init_weights(init_w); PyTorch (out=1, in) layout
    b3 = uniform(k6, (1, 1), bound2)                 # fc3.bias keeps default init
    return (w1, b1, w2, b2, w3, b3)


def actor_reference(x, params):
    """Plain-JAX reference for correctness check (always f32 params)."""
    w1, b1, w2, b2, w3, b3 = params
    h = jnp.maximum(x @ w1 + b1, 0.0)
    h = jnp.maximum(h @ w2 + b2, 0.0)
    t = jnp.tanh(h @ w3.T + b3)
    return (MAX_EMB_SIZE - MIN_EMB_SIZE) * (t + 1.0) / 2.0 + MIN_EMB_SIZE


if __name__ == "__main__":
    key = jax.random.PRNGKey(0)
    kx, kp = jax.random.split(key)
    params_f32 = init_actor_params(kp)
    params_bf16 = prepare_actor_params(params_f32)   # one-time pre-cast (hot-path default)

    # Small single-tile smoke test (B=8), f32 matmul-input path.
    x_small = jax.random.normal(kx, (8, STATE_SIZE), jnp.float32)
    out_small = jax.block_until_ready(actor_forward(x_small, params_f32))
    ref_small = actor_reference(x_small, params_f32)
    assert out_small.shape == (8, 1), out_small.shape
    assert jnp.allclose(out_small, ref_small, atol=0.25, rtol=1e-2)

    # Ragged multi-tile case (B=600 -> padded to 1024, 2 grid steps of 512 rows).
    x_big = jax.random.normal(kx, (600, STATE_SIZE), jnp.float32)
    out_big = jax.block_until_ready(actor_forward(x_big, params_f32))
    ref_big = actor_reference(x_big, params_f32)
    assert out_big.shape == (600, 1), out_big.shape
    assert jnp.allclose(out_big, ref_big, atol=0.25, rtol=1e-2)

    # Default bf16 MXU-input path (pre-cast weights, f32 accumulation/epilogue).
    out_bf16 = jax.block_until_ready(actor_forward(x_big, params_bf16))
    assert out_bf16.shape == (600, 1), out_bf16.shape
    assert jnp.allclose(out_bf16, ref_big, atol=2.0, rtol=5e-2)

    print("KERNEL_OK")
</pallas_src>

<mosaic_0001>
module attributes {stable_mosaic.version = 11 : i64} {
  func.func @_actor_kernel(%arg0: i32, %arg1: memref<16x32xf32, #tpu.memory_space<vmem>>, %arg2: memref<32x256xf32, #tpu.memory_space<vmem>>, %arg3: memref<1x256xf32, #tpu.memory_space<vmem>>, %arg4: memref<256x256xf32, #tpu.memory_space<vmem>>, %arg5: memref<1x256xf32, #tpu.memory_space<vmem>>, %arg6: memref<1x256xf32, #tpu.memory_space<vmem>>, %arg7: memref<1x1xf32, #tpu.memory_space<smem>>, %arg8: memref<1x1x16xf32, #tpu.memory_space<vmem>>) attributes {dimension_semantics = [#tpu.dimension_semantics<parallel>], iteration_bounds = array<i64: 1>, scalar_prefetch = 0 : i64, scratch_operands = 0 : i64, tpu.core_type = #tpu.core_type<tc>, window_params = [{transform_indices = @transform_0, window_bounds = array<i64: 16, 32>}, {pipeline_mode = #tpu.pipeline_mode<synchronous>, transform_indices = @transform_1, window_bounds = array<i64: 32, 256>}, {pipeline_mode = #tpu.pipeline_mode<synchronous>, transform_indices = @transform_2, window_bounds = array<i64: 1, 256>}, {pipeline_mode = #tpu.pipeline_mode<synchronous>, transform_indices = @transform_3, window_bounds = array<i64: 256, 256>}, {pipeline_mode = #tpu.pipeline_mode<synchronous>, transform_indices = @transform_4, window_bounds = array<i64: 1, 256>}, {pipeline_mode = #tpu.pipeline_mode<synchronous>, transform_indices = @transform_5, window_bounds = array<i64: 1, 256>}, {transform_indices = @transform_6, window_bounds = array<i64: 1, 1>}, {transform_indices = @transform_7, window_bounds = array<i64: 1, 1, 16>}]} {
    %c0 = arith.constant 0 : index
    %c0_0 = arith.constant 0 : index
    %0 = vector.load %arg1[%c0, %c0_0] : memref<16x32xf32, #tpu.memory_space<vmem>>, vector<16x32xf32>
    %c0_1 = arith.constant 0 : index
    %c0_2 = arith.constant 0 : index
    %1 = vector.load %arg2[%c0_1, %c0_2] : memref<32x256xf32, #tpu.memory_space<vmem>>, vector<32x256xf32>
    %cst = arith.constant dense<0.000000e+00> : vector<16x256xf32>
    %2 = tpu.matmul %0, %1, %cst {dimension_numbers = #tpu.dot_dimension_numbers<[1], [0], [0], [1], [0, 0, 1, 1], [], []>} : vector<16x32xf32>, vector<32x256xf32>, vector<16x256xf32> -> vector<16x256xf32>
    %c0_3 = arith.constant 0 : index
    %c0_4 = arith.constant 0 : index
    %3 = vector.load %arg3[%c0_3, %c0_4] : memref<1x256xf32, #tpu.memory_space<vmem>>, vector<1x256xf32>
    %4 = vector.broadcast %3 : vector<1x256xf32> to vector<16x256xf32>
    %5 = arith.addf %2, %4 : vector<16x256xf32>
    %cst_5 = arith.constant 0.000000e+00 : f32
    %6 = vector.broadcast %cst_5 : f32 to vector<16x256xf32>
    %7 = arith.maximumf %5, %6 : vector<16x256xf32>
    %c0_6 = arith.constant 0 : index
    %c0_7 = arith.constant 0 : index
    %8 = vector.load %arg4[%c0_6, %c0_7] : memref<256x256xf32, #tpu.memory_space<vmem>>, vector<256x256xf32>
    %cst_8 = arith.constant dense<0.000000e+00> : vector<16x256xf32>
    %9 = tpu.matmul %7, %8, %cst_8 {dimension_numbers = #tpu.dot_dimension_numbers<[1], [0], [0], [1], [0, 0, 1, 1], [], []>} : vector<16x256xf32>, vector<256x256xf32>, vector<16x256xf32> -> vector<16x256xf32>
    %c0_9 = arith.constant 0 : index
    %c0_10 = arith.constant 0 : index
    %10 = vector.load %arg5[%c0_9, %c0_10] : memref<1x256xf32, #tpu.memory_space<vmem>>, vector<1x256xf32>
    %11 = vector.broadcast %10 : vector<1x256xf32> to vector<16x256xf32>
    %12 = arith.addf %9, %11 : vector<16x256xf32>
    %cst_11 = arith.constant 0.000000e+00 : f32
    %13 = vector.broadcast %cst_11 : f32 to vector<16x256xf32>
    %14 = arith.maximumf %12, %13 : vector<16x256xf32>
    %c0_12 = arith.constant 0 : index
    %c0_13 = arith.constant 0 : index
    %15 = vector.load %arg6[%c0_12, %c0_13] : memref<1x256xf32, #tpu.memory_space<vmem>>, vector<1x256xf32>
    %16 = vector.broadcast %15 : vector<1x256xf32> to vector<16x256xf32>
    %17 = arith.mulf %14, %16 : vector<16x256xf32>
    %18 = vector.extract_strided_slice %17 {offsets = [0, 0], sizes = [16, 128], strides = [1, 1]} : vector<16x256xf32> to vector<16x128xf32>
    %19 = vector.extract_strided_slice %17 {offsets = [0, 128], sizes = [16, 128], strides = [1, 1]} : vector<16x256xf32> to vector<16x128xf32>
    %20 = arith.addf %18, %19 : vector<16x128xf32>
    %cst_14 = arith.constant dense<0.000000e+00> : vector<16xf32>
    %21 = vector.multi_reduction <add>, %20, %cst_14 [1] : vector<16x128xf32> to vector<16xf32>
    %22 = vector.shape_cast %21 : vector<16xf32> to vector<16x1xf32>
    %23 = tpu.transpose %22, [1, 0] : vector<16x1xf32> -> vector<1x16xf32>
    %c0_15 = arith.constant 0 : index
    %c0_16 = arith.constant 0 : index
    %24 = memref.load %arg7[%c0_15, %c0_16] : memref<1x1xf32, #tpu.memory_space<smem>>
    %25 = vector.broadcast %24 : f32 to vector<1x16xf32>
    %26 = arith.addf %23, %25 : vector<1x16xf32>
    %27 = math.tanh %26 : vector<1x16xf32>
    %cst_17 = arith.constant 6.350000e+01 : f32
    %28 = vector.broadcast %cst_17 : f32 to vector<1x16xf32>
    %29 = arith.mulf %28, %27 : vector<1x16xf32>
    %cst_18 = arith.constant 6.450000e+01 : f32
    %30 = vector.broadcast %cst_18 : f32 to vector<1x16xf32>
    %31 = arith.addf %29, %30 : vector<1x16xf32>
    %32 = vector.shape_cast %31 : vector<1x16xf32> to vector<1x1x16xf32>
    %c0_19 = arith.constant 0 : index
    %c0_20 = arith.constant 0 : index
    %c0_21 = arith.constant 0 : index
    %33 = vector.load %arg8[%c0_19, %c0_20, %c0_21] : memref<1x1x16xf32, #tpu.memory_space<vmem>>, vector<1x1x16xf32>
    tpu.vector_store %arg8[%c0_19, %c0_20, %c0_21], %32 {strides = array<i32>} : memref<1x1x16xf32, #tpu.memory_space<vmem>>, vector<1x1x16xf32>,
    return
  }
  func.func @transform_0(%arg0: i32) -> (i32, i32) {
    %c0_i32 = arith.constant 0 : i32
    %c0_i32_0 = arith.constant 0 : i32
    return %arg0, %c0_i32 : i32, i32
  }
  func.func @transform_1(%arg0: i32) -> (i32, i32) {
    %c0_i32 = arith.constant 0 : i32
    %c0_i32_0 = arith.constant 0 : i32
    %c0_i32_1 = arith.constant 0 : i32
    return %c0_i32, %c0_i32_0 : i32, i32
  }
  func.func @transform_2(%arg0: i32) -> (i32, i32) {
    %c0_i32 = arith.constant 0 : i32
    %c0_i32_0 = arith.constant 0 : i32
    %c0_i32_1 = arith.constant 0 : i32
    return %c0_i32, %c0_i32_0 : i32, i32
  }
  func.func @transform_3(%arg0: i32) -> (i32, i32) {
    %c0_i32 = arith.constant 0 : i32
    %c0_i32_0 = arith.constant 0 : i32
    %c0_i32_1 = arith.constant 0 : i32
    return %c0_i32, %c0_i32_0 : i32, i32
  }
  func.func @transform_4(%arg0: i32) -> (i32, i32) {
    %c0_i32 = arith.constant 0 : i32
    %c0_i32_0 = arith.constant 0 : i32
    %c0_i32_1 = arith.constant 0 : i32
    return %c0_i32, %c0_i32_0 : i32, i32
  }
  func.func @transform_5(%arg0: i32) -> (i32, i32) {
    %c0_i32 = arith.constant 0 : i32
    %c0_i32_0 = arith.constant 0 : i32
    %c0_i32_1 = arith.constant 0 : i32
    return %c0_i32, %c0_i32_0 : i32, i32
  }
  func.func @transform_6(%arg0: i32) -> (i32, i32) {
    %c0_i32 = arith.constant 0 : i32
    %c0_i32_0 = arith.constant 0 : i32
    %c0_i32_1 = arith.constant 0 : i32
    return %c0_i32, %c0_i32_0 : i32, i32
  }
  func.func @transform_7(%arg0: i32) -> (i32, i32, i32) {
    %c0_i32 = arith.constant 0 : i32
    %c0_i32_0 = arith.constant 0 : i32
    %c0_i32_1 = arith.constant 0 : i32
    return %arg0, %c0_i32, %c0_i32_0 : i32, i32, i32
  }
}

</mosaic_0001>

<bundles_post_ra>
// kernel: tpu_custom_call.1
= control target key start
LH: loop header
LB: loop body
LE: loop exit
PB: predicated region body
PF: predicated region fallthrough
CT: control target
= control target key end

     0   :  { %13 = vsyncpa [#allocation4], 0  ;;  %s581_s0 = inlined_call_operand.hbm [shape: f32[16,32], index: 0, kind: input, shape index: {}]   ;;  %s582_s1 = inlined_call_operand.hbm [shape: f32[32,256], index: 1, kind: input, shape index: {}]   ;;  %s583_s2 = inlined_call_operand.vmem [shape: f32[1,256], index: 2, kind: input, shape index: {}]   ;;  %s584_s3 = inlined_call_operand.hbm [shape: f32[256,256], index: 3, kind: input, shape index: {}]   ;;  %s585_s4 = inlined_call_operand.vmem [shape: f32[1,256], index: 4, kind: input, shape index: {}]   ;;  %s586_s5 = inlined_call_operand.vmem [shape: f32[1,256], index: 5, kind: input, shape index: {}]   ;;  %s587_s6 = inlined_call_operand.<no memory space> [shape: f32[1,1], index: 6, kind: input, shape index: {}]   ;;  %s588_s7 = inlined_call_operand.hbm [shape: f32[1,1,16], index: 7, kind: output, shape index: {}]  }
   0x1   :  { %14 = vsyncpa [#allocation7], 0  ;;  %s33_s26 = sshll.u32 %s582_s1, 4  ;;  %s34_s26 = int_to_ptr.hbm [resolvable:$true] %s33_s26 }
   0x2   :  { %15 = vsyncpa [#allocation5], 0  ;;  %s505_s27 = smov [#allocation6]   ;;  %s20_s8 = sshll.u32 %s581_s0, 4  ;;  %s21_s8 = int_to_ptr.hbm [resolvable:$true] %s20_s8 }
   0x3   :  { %s35_s28 = sshll.u32 %s505_s27, 4  ;;  %s506_s9 = smov 256   ;;  %s36_s28 = int_to_ptr.vmem [resolvable:$true] %s35_s28 }
   0x4   :  { %s507_s10 = smov 16   ;;  %s508_s11 = smov [#allocation3]  }
   0x5   :  { %41 = dma.hbm_to_vmem [thread:$0]  %s34_s26, 1024, %s36_s28, [#allocation7], %s506_s9, %s506_s9, %s507_s10  }
   0x6   :  { %s22_s12 = sshll.u32 %s508_s11, 4  ;;  %s509_s13 = smov 128   ;;  %s23_s12 = int_to_ptr.vmem [resolvable:$true] %s22_s12 }
   0x7   :  { %s510_s14 = smov 8   ;;  %s48_s16 = sshll.u32 %s584_s3, 4  ;;  %s49_s16 = int_to_ptr.hbm [resolvable:$true] %s48_s16 }
   0x8   :  { %28 = dma.hbm_to_vmem [thread:$0]  %s21_s8, 256, %s23_s12, [#allocation4], %s509_s13, %s509_s13, %s510_s14  }
   0x9   :  { %s511_s17 = smov [#allocation8]  }
   0xa   :  { %s50_s18 = sshll.u32 %s511_s17, 4  ;;  %s51_s18 = int_to_ptr.vmem [resolvable:$true] %s50_s18 }
   0xb   :  { %56 = dma.hbm_to_vmem [thread:$0]  %s49_s16, 8192, %s51_s18, [#allocation7], %s506_s9, %s506_s9, %s507_s10  }
   0xc   :  { %499 = dma.done.wait [#allocation4], 256  }
   0xd   :  { %500 = vsyncadd [#allocation4], 4294967040 }
   0xe   :  { %501 = dma.done.wait [#allocation7], 9216  }
   0xf   :  { %502 = vsyncadd [#allocation7], 4294958080  ;;  %v83_v0 = vld [vmem:[#allocation6 + $0x30] sm:$0xff]  ;;  %v81_v1 = vld [vmem:[#allocation6 + $0x20] sm:$0xff]  ;;  %vm91_vm0 = vcmask 261120   ;;  %s512_s22 = smov [#allocation9]  }
  0x10   :  { %v84_v2 = vld [vmem:[#allocation6 + $0x38] sm:$0xff]  ;;  %110 = vmatpush.msra.mxu0 %v83_v0  ;;  %v82_v3 = vld [vmem:[#allocation6 + $0x28] sm:$0xff]  ;;  %v79_v4 = vld [vmem:[#allocation6 + $0x10] sm:$0xff]  ;;  %s375_s23 = sshll.u32 %s512_s22, 4  ;;  %s377_s26 = sshll.u32 %s588_s7, 4  ;;  %vm368_vm1 = vcmask 122880   ;;  %s376_s23 = int_to_ptr.vmem [resolvable:$true] %s375_s23  ;;  %s378_s26 = int_to_ptr.hbm [resolvable:$true] %s377_s26 }
  0x11   :  { %133 = vmatpush.msra.mxu1 %v84_v2  ;;  %v80_v5 = vld [vmem:[#allocation6 + $0x18] sm:$0xff]  ;;  %v77_v6 = vld [vmem:[#allocation6] sm:$0xff]  ;;  %v178_v7 = vld [vmem:[#allocation8 + $0xf0] sm:$0xff] }
  0x12   :  { %111 = vmatpush.msra.mxu0 %v81_v1  ;;  %v78_v8 = vld [vmem:[#allocation6 + $0x8] sm:$0xff]  ;;  %218 = vmatpush.msra.mxu2 %v178_v7  ;;  %v176_v9 = vld [vmem:[#allocation8 + $0xe0] sm:$0xff]  ;;  %v210_v10 = vld [vmem:[#allocation8 + $0x1f0] sm:$0xff] }
  0x13   :  { %134 = vmatpush.msra.mxu1 %v82_v3  ;;  %v75_v11 = vld [vmem:[#allocation3] sm:$0xff]  ;;  %v179_v12 = vld [vmem:[#allocation8 + $0xf8] sm:$0xff]  ;;  %241 = vmatpush.msra.mxu3 %v210_v10  ;;  %v208_v15 = vld [vmem:[#allocation8 + $0x1e0] sm:$0xff] }
  0x14   :  { %112 = vmatpush.msra.mxu0 %v79_v4  ;;  %219 = vmatpush.msra.mxu2 %v176_v9  ;;  %v211_v13 = vld [vmem:[#allocation8 + $0x1f8] sm:$0xff]  ;;  %v174_v14 = vld [vmem:[#allocation8 + $0xd0] sm:$0xff]  ;;  %v177_v16 = vld [vmem:[#allocation8 + $0xe8] sm:$0xff] }
  0x15   :  { %135 = vmatpush.msra.mxu1 %v80_v5  ;;  %v209_v17 = vld [vmem:[#allocation8 + $0x1e8] sm:$0xff]  ;;  %v172_v18 = vld [vmem:[#allocation8 + $0xc0] sm:$0xff]  ;;  %v206_v19 = vld [vmem:[#allocation8 + $0x1d0] sm:$0xff]  ;;  %242 = vmatpush.msra.mxu3 %v208_v15 }
  0x16   :  { %113 = vmatpush.msra.mxu0 %v77_v6  ;;  %220 = vmatpush.msra.mxu2 %v174_v14  ;;  %v175_v20 = vld [vmem:[#allocation8 + $0xd8] sm:$0xff]  ;;  %v170_v22 = vld [vmem:[#allocation8 + $0xb0] sm:$0xff]  ;;  %v204_v23 = vld [vmem:[#allocation8 + $0x1c0] sm:$0xff] }
  0x17   :  { %136 = vmatpush.msra.mxu1 %v78_v8  ;;  %388 = vmatmul.msk.f32.vlgmr.msra.gmra.mxu0 %vm91_vm0, %v75_v11  ;;  %v207_v21 = vld [vmem:[#allocation8 + $0x1d8] sm:$0xff]  ;;  %v173_v24 = vld [vmem:[#allocation8 + $0xc8] sm:$0xff]  ;;  %v168_v28 = vld [vmem:[#allocation8 + $0xa0] sm:$0xff] }
  0x18   :  { %390 = vmatmul.msk.f32.vlgmr.msra.gmra.mxu1 %vm91_vm0, %v75_v11  ;;  %264 = vmatpush.msrb.mxu0 %v179_v12  ;;  %v205_v25 = vld [vmem:[#allocation8 + $0x1c8] sm:$0xff]  ;;  %v76_v26 = vld [vmem:[#allocation3 + $0x8] sm:$0xff]  ;;  %v202_v29 = vld [vmem:[#allocation8 + $0x1b0] sm:$0xff] }
  0x19   :  { %287 = vmatpush.msrb.mxu1 %v211_v13  ;;  %221 = vmatpush.msra.mxu2 %v172_v18  ;;  %v171_v27 = vld [vmem:[#allocation8 + $0xb8] sm:$0xff]  ;;  %v169_v31 = vld [vmem:[#allocation8 + $0xa8] sm:$0xff]  ;;  %v166_v32 = vld [vmem:[#allocation8 + $0x90] sm:$0xff] }
  0x1a   :  { %265 = vmatpush.msrb.mxu0 %v177_v16  ;;  %243 = vmatpush.msra.mxu3 %v206_v19  ;;  %v203_v30 = vld [vmem:[#allocation8 + $0x1b8] sm:$0xff]  ;;  %v200_v33 = vld [vmem:[#allocation8 + $0x1a0] sm:$0xff]  ;;  %v201_v34 = vld [vmem:[#allocation8 + $0x1a8] sm:$0xff] }
  0x1b   :  { %288 = vmatpush.msrb.mxu1 %v209_v17  ;;  %222 = vmatpush.msra.mxu2 %v170_v22  ;;  %v167_v35 = vld [vmem:[#allocation8 + $0x98] sm:$0xff]  ;;  %v164_v36 = vld [vmem:[#allocation8 + $0x80] sm:$0xff]  ;;  %v198_v37 = vld [vmem:[#allocation8 + $0x190] sm:$0xff] }
  0x1c   :  { %266 = vmatpush.msrb.mxu0 %v175_v20  ;;  %244 = vmatpush.msra.mxu3 %v204_v23  ;;  %v199_v38 = vld [vmem:[#allocation8 + $0x198] sm:$0xff]  ;;  %v165_v39 = vld [vmem:[#allocation8 + $0x88] sm:$0xff]  ;;  %v162_v40 = vld [vmem:[#allocation8 + $0x70] sm:$0xff] }
  0x1d   :  { %289 = vmatpush.msrb.mxu1 %v207_v21  ;;  %223 = vmatpush.msra.mxu2 %v168_v28  ;;  %v196_v41 = vld [vmem:[#allocation8 + $0x180] sm:$0xff]  ;;  %v197_v42 = vld [vmem:[#allocation8 + $0x188] sm:$0xff]  ;;  %v163_v43 = vld [vmem:[#allocation8 + $0x78] sm:$0xff] }
  0x1e   :  { %267 = vmatpush.msrb.mxu0 %v173_v24  ;;  %245 = vmatpush.msra.mxu3 %v202_v29  ;;  %v160_v44 = vld [vmem:[#allocation8 + $0x60] sm:$0xff]  ;;  %v194_v45 = vld [vmem:[#allocation8 + $0x170] sm:$0xff]  ;;  %v195_v46 = vld [vmem:[#allocation8 + $0x178] sm:$0xff] }
  0x1f   :  { %290 = vmatpush.msrb.mxu1 %v205_v25  ;;  %389 = vmatmul.msk.f32.gmra.mxu0 %vm91_vm0, %v76_v26  ;;  %v161_v47 = vld [vmem:[#allocation8 + $0x68] sm:$0xff]  ;;  %v158_v48 = vld [vmem:[#allocation8 + $0x50] sm:$0xff]  ;;  %v192_v49 = vld [vmem:[#allocation8 + $0x160] sm:$0xff] }
  0x20   :  { %391 = vmatmul.msk.f32.gmra.mxu1 %vm91_vm0, %v76_v26  ;;  %268 = vmatpush.msrb.mxu0 %v171_v27  ;;  %v193_v50 = vld [vmem:[#allocation8 + $0x168] sm:$0xff]  ;;  %v159_v51 = vld [vmem:[#allocation8 + $0x58] sm:$0xff]  ;;  %v156_v52 = vld [vmem:[#allocation8 + $0x40] sm:$0xff] }
  0x21   :  { %291 = vmatpush.msrb.mxu1 %v203_v30  ;;  %224 = vmatpush.msra.mxu2 %v166_v32  ;;  %v190_v53 = vld [vmem:[#allocation8 + $0x150] sm:$0xff]  ;;  %v191_v54 = vld [vmem:[#allocation8 + $0x158] sm:$0xff]  ;;  %v157_v55 = vld [vmem:[#allocation8 + $0x48] sm:$0xff] }
  0x22   :  { %269 = vmatpush.msrb.mxu0 %v169_v31  ;;  %246 = vmatpush.msra.mxu3 %v200_v33  ;;  %v154_v56 = vld [vmem:[#allocation8 + $0x30] sm:$0xff]  ;;  %v188_v57 = vld [vmem:[#allocation8 + $0x140] sm:$0xff]  ;;  %v189_v58 = vld [vmem:[#allocation8 + $0x148] sm:$0xff] }
  0x23   :  { %292 = vmatpush.msrb.mxu1 %v201_v34  ;;  %225 = vmatpush.msra.mxu2 %v164_v36  ;;  %v155_v59 = vld [vmem:[#allocation8 + $0x38] sm:$0xff]  ;;  %v152_v60 = vld [vmem:[#allocation8 + $0x20] sm:$0xff]  ;;  %v186_v61 = vld [vmem:[#allocation8 + $0x130] sm:$0xff] }
  0x24   :  { %270 = vmatpush.msrb.mxu0 %v167_v35  ;;  %247 = vmatpush.msra.mxu3 %v198_v37  ;;  %v153_v62 = vld [vmem:[#allocation8 + $0x28] sm:$0xff]  ;;  %v187_v63 = vld [vmem:[#allocation8 + $0x138] sm:$0xff]  ;;  %v150_v0 = vld [vmem:[#allocation8 + $0x10] sm:$0xff] }
  0x25   :  { %293 = vmatpush.msrb.mxu1 %v199_v38  ;;  %226 = vmatpush.msra.mxu2 %v162_v40  ;;  %v184_v1 = vld [vmem:[#allocation8 + $0x120] sm:$0xff]  ;;  %v151_v2 = vld [vmem:[#allocation8 + $0x18] sm:$0xff]  ;;  %v185_v3 = vld [vmem:[#allocation8 + $0x128] sm:$0xff] }
  0x26   :  { %271 = vmatpush.msrb.mxu0 %v165_v39  ;;  %248 = vmatpush.msra.mxu3 %v196_v41  ;;  %v148_v4 = vld [vmem:[#allocation8] sm:$0xff]  ;;  %v182_v5 = vld [vmem:[#allocation8 + $0x110] sm:$0xff]  ;;  %v149_v6 = vld [vmem:[#allocation8 + $0x8] sm:$0xff] }
  0x27   :  { %294 = vmatpush.msrb.mxu1 %v197_v42  ;;  %227 = vmatpush.msra.mxu2 %v160_v44  ;;  %v183_v7 = vld [vmem:[#allocation8 + $0x118] sm:$0xff]  ;;  %v180_v8 = vld [vmem:[#allocation8 + $0x100] sm:$0xff]  ;;  %v181_v9 = vld [vmem:[#allocation8 + $0x108] sm:$0xff] }
  0x28   :  { %272 = vmatpush.msrb.mxu0 %v163_v43  ;;  %249 = vmatpush.msra.mxu3 %v194_v45  ;;  %v85_v10 = vld [vmem:[%s583_s2] sm:$0x3] }
  0x29   :  { %295 = vmatpush.msrb.mxu1 %v195_v46  ;;  %228 = vmatpush.msra.mxu2 %v158_v48  ;;  %v87_v11 = vperm.slane %v85_v10, 0  ;;  %v88_v12 = vperm.slane %v85_v10, 1  ;;  %v212_v25 = vld [vmem:[%s585_s4] sm:$0x3] }
  0x2a   :  { %273 = vmatpush.msrb.mxu0 %v161_v47  ;;  %250 = vmatpush.msra.mxu3 %v192_v49  ;;  %v215_v26 = vperm.slane %v212_v25, 1  ;;  %v214_v30 = vperm.slane %v212_v25, 0  ;;  %v314_v32 = vld [vmem:[%s586_s5] sm:$0x3] }
  0x2b   :  { %296 = vmatpush.msrb.mxu1 %v193_v50  ;;  %229 = vmatpush.msra.mxu2 %v156_v52  ;;  %v317_v37 = vperm.slane %v314_v32, 1  ;;  %v316_v41 = vperm.slane %v314_v32, 0 }
  0x2c   :  { %274 = vmatpush.msrb.mxu0 %v159_v51  ;;  %251 = vmatpush.msra.mxu3 %v190_v53 }
  0x2d   :  { %297 = vmatpush.msrb.mxu1 %v191_v54  ;;  %230 = vmatpush.msra.mxu2 %v154_v56 }
  0x2e   :  { %275 = vmatpush.msrb.mxu0 %v157_v55  ;;  %252 = vmatpush.msra.mxu3 %v188_v57 }
  0x2f   :  { %298 = vmatpush.msrb.mxu1 %v189_v58  ;;  %231 = vmatpush.msra.mxu2 %v152_v60 }
  0x30   :  { %276 = vmatpush.msrb.mxu0 %v155_v59  ;;  %253 = vmatpush.msra.mxu3 %v186_v61  ;;  %v363_v59 = vstv %s587_s6 }
  0x31   :  { %299 = vmatpush.msrb.mxu1 %v187_v63  ;;  %232 = vmatpush.msra.mxu2 %v150_v0 }
  0x32   :  { %277 = vmatpush.msrb.mxu0 %v153_v62  ;;  %254 = vmatpush.msra.mxu3 %v184_v1 }
  0x33   :  { %300 = vmatpush.msrb.mxu1 %v185_v3  ;;  %233 = vmatpush.msra.mxu2 %v148_v4 }
  0x34   :  { %278 = vmatpush.msrb.mxu0 %v151_v2  ;;  %255 = vmatpush.msra.mxu3 %v182_v5 }
  0x35   :  { %301 = vmatpush.msrb.mxu1 %v183_v7 }
  0x36   :  { %279 = vmatpush.msrb.mxu0 %v149_v6  ;;  %256 = vmatpush.msra.mxu3 %v180_v8 }
  0x37   :  { %302 = vmatpush.msrb.mxu1 %v181_v9 }
  0x94   :  { %v115_v13 = vpop.f32.mrf.mxu0 }
  0x95   :  { %v138_v14 = vpop.f32.mrf.mxu1  ;;  %v116_v15 = vadd.f32 %v115_v13, %v87_v11 }
  0x96   :  { %v139_v16 = vadd.f32 %v138_v14, %v88_v12 }
  0x97   :  { %v144_v17 = vmax.f32 %v116_v15, 0.0 }
  0x98   :  { %v145_v18 = vmax.f32 %v139_v16, 0.0 }
  0x99   :  { %234 = vmatmul.f32.vlgmr.msra.gmra.mxu2 %v144_v17  ;;  %280 = vmatmul.f32.vlgmr.msrb.gmra.mxu0 %v144_v17 }
  0x9a   :  { %257 = vmatmul.f32.vlgmr.msra.gmra.mxu3 %v145_v18  ;;  %303 = vmatmul.f32.vlgmr.msrb.gmra.mxu1 %v145_v18 }
  0x9c   :  { %v118_v19 = vpop.f32.mrf.mxu0 }
  0x9d   :  { %v141_v20 = vpop.f32.mrf.mxu1  ;;  %v119_v21 = vadd.f32 %v118_v19, %v87_v11 }
  0x9e   :  { %v142_v22 = vadd.f32 %v141_v20, %v88_v12 }
  0x9f   :  { %v146_v23 = vmax.f32 %v119_v21, 0.0 }
  0xa0   :  { %v147_v24 = vmax.f32 %v142_v22, 0.0 }
  0xa1   :  { %237 = vmatmul.f32.gmra.mxu2 %v146_v23  ;;  %283 = vmatmul.f32.gmra.mxu0 %v146_v23 }
  0xa2   :  { %260 = vmatmul.f32.gmra.mxu3 %v147_v24  ;;  %306 = vmatmul.f32.gmra.mxu1 %v147_v24 }
 0x116   :  { %v281_v27 = vpop.f32.mrf.mxu0 }
 0x117   :  { %v282_v28 = vadd.f32 %v281_v27, %v215_v26  ;;  %v304_v29 = vpop.f32.mrf.mxu1 }
 0x119   :  { %v305_v31 = vadd.f32 %v304_v29, %v282_v28 }
 0x11b   :  { %v311_v38 = vmax.f32 %v305_v31, 0.0 }
 0x11c   :  { %v235_v33 = vpop.f32.mrf.mxu2 }
 0x11d   :  { %v236_v34 = vadd.f32 %v235_v33, %v214_v30  ;;  %v258_v35 = vpop.f32.mrf.mxu3  ;;  %v321_v46 = vmul.f32 %v317_v37, %v311_v38 }
 0x11e   :  { %v284_v36 = vpop.f32.mrf.mxu0 }
 0x11f   :  { %v259_v39 = vadd.f32 %v258_v35, %v236_v34  ;;  %v285_v40 = vadd.f32 %v284_v36, %v215_v26  ;;  %v307_v42 = vpop.f32.mrf.mxu1 }
 0x121   :  { %v310_v43 = vmax.f32 %v259_v39, 0.0  ;;  %v308_v44 = vadd.f32 %v307_v42, %v285_v40 }
 0x123   :  { %v320_v45 = vmul.f32 %v316_v41, %v310_v43  ;;  %v313_v51 = vmax.f32 %v308_v44, 0.0 }
 0x124   :  { %v238_v47 = vpop.f32.mrf.mxu2 }
 0x125   :  { %v239_v48 = vadd.f32 %v238_v47, %v214_v30  ;;  %v261_v49 = vpop.f32.mrf.mxu3  ;;  %v324_v50 = vadd.f32 %v321_v46, %v320_v45  ;;  %v323_v54 = vmul.f32 %v317_v37, %v313_v51 }
 0x127   :  { %v262_v52 = vadd.f32 %v261_v49, %v239_v48  ;;  %326 = vadd.xlane.f32.xlu0 %v324_v50 }
 0x129   :  { %v312_v53 = vmax.f32 %v262_v52, 0.0 }
 0x12b   :  { %v322_v55 = vmul.f32 %v316_v41, %v312_v53 }
 0x12d   :  { %v325_v56 = vadd.f32 %v323_v54, %v322_v55 }
 0x12f   :  { %328 = vadd.xlane.f32.xlu0 %v325_v56 }
 0x19a   :  { %v327_v57 = vpop.xlane.xlu0 %326 }
 0x19b   :  { %330 = vxpose.xlu1.b32.start [1/2] (short) (narrow) %v327_v57, 8 }
 0x1a2   :  { %v329_v58 = vpop.xlane.xlu0 %328 }
 0x1a3   :  { %331 = vxpose.xlu1.b32.end [2/2] (short) (narrow) %v329_v58, 8 }
 0x23f   :  { %v346_v60 = vpop.trf.xlu1 }
 0x240   :  { %v364_v61 = vadd.f32 %v363_v59, %v346_v60 }
 0x242   :  { %401 = vtanh.f32 %v364_v61 }
 0x248   :  { %v402_v62 = vpop.eup %401 }
 0x249   :  { %v366_v63 = vmul.f32 63.5, %v402_v62 }
 0x24b   :  { %v367_v0 = vadd.f32 64.5, %v366_v63 }
 0x24d   :  { %369 = vst.msk [vmem:[#allocation9] sm:$0x1] %vm368_vm1, %v367_v0 }
 0x24e   :  { %380 = dma.vmem_to_hbm [thread:$0]  %s376_s23, 16, %s378_s26, [#allocation5]  }
 0x24f   :  { %503 = dma.done.wait [#allocation5], 16  }
 0x250   :  { %504 = vsyncadd [#allocation5], 4294967280 }
 0x251   :  { %385 = vsyncpa [#allocation4], 1 }
 0x252   :  { %386 = vsyncpa [#allocation7], 1 }
 0x253   :  { %387 = vsyncpa [#allocation5], 1 }

</bundles_post_ra>
